<compile_context>
chip_gen: v7x
topology: tpu7x:2x2x1
jax: 0.10.0
libtpu: 0.0.40
codegen_flags: <defaults>
</compile_context>

<pallas_src>
import jax
import jax.numpy as jnp
from jax.experimental import pallas as pl
from jax.experimental.pallas import tpu as pltpu

LANES = 128
SUBLANES = 8


def _chip_config():
    """Per-generation tile / sharding / VMEM choices (conservative fallback)."""
    try:
        kind = jax.devices()[0].device_kind.lower()
    except Exception:
        kind = ""
    if ("v5 lite" in kind) or ("v5e" in kind) or ("v5lite" in kind):
        # v5e: 1 TensorCore, 16 MiB default scoped VMEM -> 4096-row tiles
        # (8 MiB double-buffered input footprint), raise the scoped limit.
        return dict(max_tile_rows=4096, num_shards=1, core_parallel=False,
                    extra_buffer=False, vmem_limit=64 << 20)
    if ("v7" in kind) or ("tpu7" in kind):
        # v7x: 2 TensorCores, 64 MiB physical VMEM -> 8192-row tiles
        # (16 MiB footprint), CORE_PARALLEL split across the two TCs.
        return dict(max_tile_rows=8192, num_shards=2, core_parallel=True,
                    extra_buffer=True, vmem_limit=48 << 20)
    # v6e (and default): 1 TensorCore, 128 MiB VMEM.
    return dict(max_tile_rows=8192, num_shards=1, core_parallel=False,
                extra_buffer=False, vmem_limit=64 << 20)


def _make_kernel(rows, tile_rows, tiles_per_shard):
    blocks_per_tile = tile_rows // SUBLANES

    def kernel(p_ref, t_ref, sum_ref, sumsq_ref):
        s = pl.program_id(0)           # shard (core-parallel on v7x)
        i = pl.program_id(1)           # tile within shard (reduction axis)

        @pl.when(i == 0)
        def _init():
            sum_ref[...] = jnp.zeros_like(sum_ref)
            sumsq_ref[...] = jnp.zeros_like(sumsq_ref)

        tile_idx = s * tiles_per_shard + i          # logical (unclamped) tile
        row_start = tile_idx * tile_rows

        def log_ratio():
            # Upcast after load (bf16 inputs DMA at half the HBM traffic);
            # single transcendental per element: log(p/t).
            p = p_ref[...].astype(jnp.float32)
            t = t_ref[...].astype(jnp.float32)
            return jnp.log(p / t)

        def accumulate(d):
            # (tile_rows, 128) -> (tile_rows//8, 8, 128): layout-preserving,
            # reduce over the leading axis is pure vreg-wise VPU adds (no XLU).
            d3 = d.reshape(blocks_per_tile, SUBLANES, LANES)
            sum_ref[...] += jnp.sum(d3, axis=0)
            sumsq_ref[...] += jnp.sum(d3 * d3, axis=0)

        # Fast path: fully in-bounds tile, no masking.
        @pl.when(row_start + tile_rows <= rows)
        def _full():
            accumulate(log_ratio())

        if rows % tile_rows != 0:
            # Partial last tile: mask rows past the real data (OOB garbage /
            # NaN / Inf in masked rows is discarded by the where).
            @pl.when(jnp.logical_and(row_start < rows,
                                     row_start + tile_rows > rows))
            def _edge():
                row_ids = row_start + jax.lax.broadcasted_iota(
                    jnp.int32, (tile_rows, LANES), 0)
                d = jnp.where(row_ids < rows, log_ratio(), jnp.float32(0.0))
                accumulate(d)

        # Tiles with row_start >= rows (shard rounding) contribute nothing.

    return kernel


def scale_invariant_loss(y_pred, y_true, lam=0.5):
    assert y_pred.shape == y_true.shape
    n_elems = y_pred.size
    cfg = _chip_config()

    def prep(x):
        x = jnp.asarray(x).reshape(-1)               # zero-copy for contiguous
        if x.dtype not in (jnp.float32, jnp.bfloat16):
            x = x.astype(jnp.float32)                 # rare path; bf16/f32 pass through
        return x

    p = prep(y_pred)
    t = prep(y_true)

    # Sub-32-bit dtypes pack 2 rows per sublane word -> need 16-row alignment.
    sublane_align = SUBLANES
    if p.dtype.itemsize < 4 or t.dtype.itemsize < 4:
        sublane_align = 2 * SUBLANES
    align = sublane_align * LANES

    # Aligned prefix goes through the kernel; the tail (< align elements) is
    # folded in with plain JAX instead of jnp.pad-ing both full tensors.
    prefix = (n_elems // align) * align
    tail = n_elems - prefix

    total_sum = jnp.float32(0.0)
    total_sumsq = jnp.float32(0.0)

    if tail:
        # TODO(synk): when misaligned, the prefix slice below may still cost
        # one copy; a fully copy-free path needs element-level masking over an
        # ANY-space ref with manual DMA.
        d_tail = jnp.log(p[prefix:].astype(jnp.float32)
                         / t[prefix:].astype(jnp.float32))
        total_sum = total_sum + jnp.sum(d_tail)
        total_sumsq = total_sumsq + jnp.sum(d_tail * d_tail)

    if prefix:
        rows = prefix // LANES                       # multiple of sublane_align
        p2 = p[:prefix].reshape(rows, LANES)         # zero-copy when tail == 0
        t2 = t[:prefix].reshape(rows, LANES)

        tile_rows = min(cfg["max_tile_rows"], rows)  # multiple of sublane_align
        total_tiles = pl.cdiv(rows, tile_rows)
        num_shards = cfg["num_shards"] if total_tiles >= cfg["num_shards"] else 1
        tiles_per_shard = pl.cdiv(total_tiles, num_shards)

        kernel = _make_kernel(rows, tile_rows, tiles_per_shard)

        def in_map(s, i):
            # Clamp so fetched blocks are always valid; the kernel skips
            # logical tiles past the end, so a clamped duplicate contributes 0.
            return (jnp.minimum(s * tiles_per_shard + i, total_tiles - 1), 0)

        def in_spec():
            if cfg["extra_buffer"]:
                try:
                    return pl.BlockSpec((tile_rows, LANES), in_map,
                                        pipeline_mode=pl.Buffered(3))
                except TypeError:
                    pass
            return pl.BlockSpec((tile_rows, LANES), in_map)

        arb = getattr(pltpu, "ARBITRARY", "arbitrary")
        if num_shards > 1 and cfg["core_parallel"]:
            shard_sem = getattr(pltpu, "CORE_PARALLEL",
                                getattr(pltpu, "PARALLEL", "parallel"))
        else:
            shard_sem = arb

        sum_out, sumsq_out = pl.pallas_call(
            kernel,
            out_shape=(
                jax.ShapeDtypeStruct((num_shards * SUBLANES, LANES), jnp.float32),
                jax.ShapeDtypeStruct((num_shards * SUBLANES, LANES), jnp.float32),
            ),
            grid_spec=pltpu.PrefetchScalarGridSpec(
                num_scalar_prefetch=0,
                grid=(num_shards, tiles_per_shard),
                in_specs=[in_spec(), in_spec()],
                out_specs=[
                    pl.BlockSpec((SUBLANES, LANES), lambda s, i: (s, 0)),
                    pl.BlockSpec((SUBLANES, LANES), lambda s, i: (s, 0)),
                ],
            ),
            compiler_params=pltpu.CompilerParams(
                dimension_semantics=(shard_sem, arb),
                vmem_limit_bytes=cfg["vmem_limit"],
            ),
        )(p2, t2)

        total_sum = total_sum + jnp.sum(sum_out)
        total_sumsq = total_sumsq + jnp.sum(sumsq_out)

    n = jnp.float32(n_elems)
    mean_d = total_sum / n
    mean_d2 = total_sumsq / n
    return mean_d2 - lam * mean_d * mean_d


if __name__ == "__main__":
    key = jax.random.PRNGKey(0)
    k1, k2 = jax.random.split(key)
    # NCHW inputs; strictly positive (log is applied to both).
    shape = (2, 4, 16, 16)
    y_pred = jax.random.uniform(k1, shape, jnp.float32, minval=0.1, maxval=2.0)
    y_true = jax.random.uniform(k2, shape, jnp.float32, minval=0.1, maxval=2.0)

    loss = scale_invariant_loss(y_pred, y_true, lam=0.5)
    loss = jax.block_until_ready(loss)

    # Pure-JAX reference check.
    ld = jnp.log(y_pred) - jnp.log(y_true)
    ref = jnp.mean(ld ** 2) - 0.5 * jnp.mean(ld) ** 2
    assert jnp.allclose(loss, ref, rtol=1e-5, atol=1e-6), (loss, ref)

    print("KERNEL_OK")
</pallas_src>

<mosaic_0001>
module attributes {stable_mosaic.version = 11 : i64} {
  func.func @kernel(%arg0: i32, %arg1: i32, %arg2: memref<16x128xf32, #tpu.memory_space<vmem>>, %arg3: memref<16x128xf32, #tpu.memory_space<vmem>>, %arg4: memref<8x128xf32, #tpu.memory_space<vmem>>, %arg5: memref<8x128xf32, #tpu.memory_space<vmem>>) attributes {dimension_semantics = [#tpu.dimension_semantics<arbitrary>, #tpu.dimension_semantics<arbitrary>], iteration_bounds = array<i64: 1, 1>, scalar_prefetch = 0 : i64, scratch_operands = 0 : i64, tpu.core_type = #tpu.core_type<tc>, window_params = [{transform_indices = @transform_0, window_bounds = array<i64: 16, 128>}, {transform_indices = @transform_1, window_bounds = array<i64: 16, 128>}, {transform_indices = @transform_2, window_bounds = array<i64: 8, 128>}, {transform_indices = @transform_3, window_bounds = array<i64: 8, 128>}]} {
    %c0_i32 = arith.constant 0 : i32
    %0 = arith.cmpi eq, %arg1, %c0_i32 : i32
    %1 = arith.extui %0 : i1 to i32
    %c0_i32_0 = arith.constant 0 : i32
    %2 = arith.cmpi ne, %1, %c0_i32_0 : i32
    scf.if %2 {
      %cst = arith.constant 0.000000e+00 : f32
      %10 = vector.broadcast %cst : f32 to vector<8x128xf32>
      %c0 = arith.constant 0 : index
      %c0_4 = arith.constant 0 : index
      %11 = vector.load %arg4[%c0, %c0_4] : memref<8x128xf32, #tpu.memory_space<vmem>>, vector<8x128xf32>
      tpu.vector_store %arg4[%c0, %c0_4], %10 {strides = array<i32>} : memref<8x128xf32, #tpu.memory_space<vmem>>, vector<8x128xf32>,
      %cst_5 = arith.constant 0.000000e+00 : f32
      %12 = vector.broadcast %cst_5 : f32 to vector<8x128xf32>
      %c0_6 = arith.constant 0 : index
      %c0_7 = arith.constant 0 : index
      %13 = vector.load %arg5[%c0_6, %c0_7] : memref<8x128xf32, #tpu.memory_space<vmem>>, vector<8x128xf32>
      tpu.vector_store %arg5[%c0_6, %c0_7], %12 {strides = array<i32>} : memref<8x128xf32, #tpu.memory_space<vmem>>, vector<8x128xf32>,
    } else {
    }
    %c1_i32 = arith.constant 1 : i32
    %3 = arith.muli %arg0, %c1_i32 : i32
    %4 = arith.addi %3, %arg1 : i32
    %c16_i32 = arith.constant 16 : i32
    %5 = arith.muli %4, %c16_i32 : i32
    %c16_i32_1 = arith.constant 16 : i32
    %6 = arith.addi %5, %c16_i32_1 : i32
    %c16_i32_2 = arith.constant 16 : i32
    %7 = arith.cmpi sle, %6, %c16_i32_2 : i32
    %8 = arith.extui %7 : i1 to i32
    %c0_i32_3 = arith.constant 0 : i32
    %9 = arith.cmpi ne, %8, %c0_i32_3 : i32
    scf.if %9 {
      %c0 = arith.constant 0 : index
      %c0_4 = arith.constant 0 : index
      %10 = vector.load %arg2[%c0, %c0_4] : memref<16x128xf32, #tpu.memory_space<vmem>>, vector<16x128xf32>
      %c0_5 = arith.constant 0 : index
      %c0_6 = arith.constant 0 : index
      %11 = vector.load %arg3[%c0_5, %c0_6] : memref<16x128xf32, #tpu.memory_space<vmem>>, vector<16x128xf32>
      %12 = arith.divf %10, %11 : vector<16x128xf32>
      %13 = math.log %12 : vector<16x128xf32>
      %14 = vector.shape_cast %13 : vector<16x128xf32> to vector<2x8x128xf32>
      %c0_7 = arith.constant 0 : index
      %c0_8 = arith.constant 0 : index
      %15 = vector.load %arg4[%c0_7, %c0_8] : memref<8x128xf32, #tpu.memory_space<vmem>>, vector<8x128xf32>
      %cst = arith.constant dense<0.000000e+00> : vector<8x128xf32>
      %16 = vector.multi_reduction <add>, %14, %cst [0] : vector<2x8x128xf32> to vector<8x128xf32>
      %17 = arith.addf %15, %16 : vector<8x128xf32>
      %c0_9 = arith.constant 0 : index
      %c0_10 = arith.constant 0 : index
      %18 = vector.load %arg4[%c0_9, %c0_10] : memref<8x128xf32, #tpu.memory_space<vmem>>, vector<8x128xf32>
      tpu.vector_store %arg4[%c0_9, %c0_10], %17 {strides = array<i32>} : memref<8x128xf32, #tpu.memory_space<vmem>>, vector<8x128xf32>,
      %c0_11 = arith.constant 0 : index
      %c0_12 = arith.constant 0 : index
      %19 = vector.load %arg5[%c0_11, %c0_12] : memref<8x128xf32, #tpu.memory_space<vmem>>, vector<8x128xf32>
      %20 = arith.mulf %14, %14 : vector<2x8x128xf32>
      %cst_13 = arith.constant dense<0.000000e+00> : vector<8x128xf32>
      %21 = vector.multi_reduction <add>, %20, %cst_13 [0] : vector<2x8x128xf32> to vector<8x128xf32>
      %22 = arith.addf %19, %21 : vector<8x128xf32>
      %c0_14 = arith.constant 0 : index
      %c0_15 = arith.constant 0 : index
      %23 = vector.load %arg5[%c0_14, %c0_15] : memref<8x128xf32, #tpu.memory_space<vmem>>, vector<8x128xf32>
      tpu.vector_store %arg5[%c0_14, %c0_15], %22 {strides = array<i32>} : memref<8x128xf32, #tpu.memory_space<vmem>>, vector<8x128xf32>,
    } else {
    }
    return
  }
  func.func @transform_0(%arg0: i32, %arg1: i32) -> (i32, i32) {
    %c1_i32 = arith.constant 1 : i32
    %0 = arith.muli %arg0, %c1_i32 : i32
    %1 = arith.addi %0, %arg1 : i32
    %c0_i32 = arith.constant 0 : i32
    %2 = arith.minsi %1, %c0_i32 : i32
    %c0_i32_0 = arith.constant 0 : i32
    %c0_i32_1 = arith.constant 0 : i32
    return %2, %c0_i32_0 : i32, i32
  }
  func.func @transform_1(%arg0: i32, %arg1: i32) -> (i32, i32) {
    %c1_i32 = arith.constant 1 : i32
    %0 = arith.muli %arg0, %c1_i32 : i32
    %1 = arith.addi %0, %arg1 : i32
    %c0_i32 = arith.constant 0 : i32
    %2 = arith.minsi %1, %c0_i32 : i32
    %c0_i32_0 = arith.constant 0 : i32
    %c0_i32_1 = arith.constant 0 : i32
    return %2, %c0_i32_0 : i32, i32
  }
  func.func @transform_2(%arg0: i32, %arg1: i32) -> (i32, i32) {
    %c0_i32 = arith.constant 0 : i32
    %c0_i32_0 = arith.constant 0 : i32
    return %arg0, %c0_i32 : i32, i32
  }
  func.func @transform_3(%arg0: i32, %arg1: i32) -> (i32, i32) {
    %c0_i32 = arith.constant 0 : i32
    %c0_i32_0 = arith.constant 0 : i32
    return %arg0, %c0_i32 : i32, i32
  }
}

</mosaic_0001>

<bundles_post_ra>
// kernel: tpu_custom_call.1
= control target key start
LH: loop header
LB: loop body
LE: loop exit
PB: predicated region body
PF: predicated region fallthrough
CT: control target
= control target key end

     0   :  { %9 = vsyncpa [#allocation3], 0  ;;  %s317_s0 = inlined_call_operand.hbm [shape: f32[16,128], index: 0, kind: input, shape index: {}]   ;;  %s318_s1 = inlined_call_operand.hbm [shape: f32[16,128], index: 1, kind: input, shape index: {}]   ;;  %s319_s2 = inlined_call_operand.hbm [shape: f32[8,128], index: 2, kind: output, shape index: {0}]   ;;  %s320_s3 = inlined_call_operand.hbm [shape: f32[8,128], index: 3, kind: output, shape index: {1}]  }
   0x1   :  { %10 = vsyncpa [#allocation6], 0 }
   0x2   :  { %11 = vsyncpa [#allocation4], 0 }
   0x3   :  { %12 = vsyncpa [#allocation9], 0  ;;  %s243_s12 = smov [#allocation2]   ;;  %s147_s16 = scalar_lea.hbm %s317_s0, 256 }
   0x4   :  { %s24_s13 = sshll.u32 %s243_s12, 4  ;;  %p148_p0 = scmp.ne.s32.totalorder %s317_s0, %s147_s16  ;;  %s25_s13 = int_to_ptr.vmem [resolvable:$true] %s24_s13 }
   0x5   :  { %p151_p1 = scmp.lt.u32.totalorder %s147_s16, %s317_s0 }
   0x7   :  { %p153_p2 = pnand %p151_p1, %p148_p0 }
   0x9   :  { %156 = shalt.err (!%p153_p2)
}
   0xa   :  { %s157_s21 = scalar_lea.vmem %s25_s13, 256  ;;  %p162_p4 = scmp.lt.s32.totalorder %s25_s13, %s25_s13 }
   0xb   :  { %p158_p3 = scmp.ne.s32.totalorder %s25_s13, %s157_s21  ;;  %p163_p5 = scmp.lt.s32.totalorder %s157_s21, %s157_s21 }
   0xd   :  { %p164_p6 = por %p163_p5, %p162_p4 }
   0xf   :  { %p165_p7 = pnand %p164_p6, %p158_p3 }
  0x11   :  { %168 = shalt.err (!%p165_p7)
}
  0x12   :  { %s244_s22 = smov 128   ;;  %s245_s23 = smov 8  }
  0x13   :  { %30 = dma.hbm_to_vmem [thread:$0]  %s317_s0, 256, %s25_s13, [#allocation3], %s244_s22, %s244_s22, %s245_s23  }
  0x14   :  { %s246_s26 = smov [#allocation5]   ;;  %s169_s30 = scalar_lea.hbm %s318_s1, 256 }
  0x15   :  { %s42_s27 = sshll.u32 %s246_s26, 4  ;;  %p170_p8 = scmp.ne.s32.totalorder %s318_s1, %s169_s30  ;;  %s43_s27 = int_to_ptr.vmem [resolvable:$true] %s42_s27 }
  0x16   :  { %p173_p9 = scmp.lt.u32.totalorder %s169_s30, %s318_s1 }
  0x18   :  { %p175_p10 = pnand %p173_p9, %p170_p8 }
  0x1a   :  { %178 = shalt.err (!%p175_p10)
}
  0x1b   :  { %s179_s8 = scalar_lea.vmem %s43_s27, 256  ;;  %p184_p12 = scmp.lt.s32.totalorder %s43_s27, %s43_s27 }
  0x1c   :  { %p180_p11 = scmp.ne.s32.totalorder %s43_s27, %s179_s8  ;;  %p185_p13 = scmp.lt.s32.totalorder %s179_s8, %s179_s8 }
  0x1e   :  { %p186_p0 = por %p185_p13, %p184_p12 }
  0x20   :  { %p187_p1 = pnand %p186_p0, %p180_p11 }
  0x22   :  { %190 = shalt.err (!%p187_p1)
}
  0x23   :  { %48 = dma.hbm_to_vmem [thread:$0]  %s318_s1, 256, %s43_s27, [#allocation6], %s244_s22, %s244_s22, %s245_s23  }
  0x24   :  { %235 = dma.done.wait [#allocation3], 256  }
  0x25   :  { %236 = vsyncadd [#allocation3], 4294967040 }
  0x26   :  { %237 = dma.done.wait [#allocation6], 256  }
  0x27   :  { %238 = vsyncadd [#allocation6], 4294967040  ;;  %v78_v0 = vld [vmem:[#allocation5] sm:$0xff]  ;;  %v79_v1 = vld [vmem:[#allocation5 + $0x8] sm:$0xff]  ;;  %s247_s1 = smov [#allocation7]   ;;  %s248_s11 = smov [#allocation8]  }
  0x28   :  { %139 = vrcp.f32 %v78_v0  ;;  %v76_v2 = vld [vmem:[#allocation2] sm:$0xff]  ;;  %v77_v3 = vld [vmem:[#allocation2 + $0x8] sm:$0xff]  ;;  %s104_s10 = sshll.u32 %s247_s1, 4  ;;  %s114_s12 = sshll.u32 %s248_s11, 4  ;;  %s105_s10 = int_to_ptr.vmem [resolvable:$true] %s104_s10  ;;  %s115_s12 = int_to_ptr.vmem [resolvable:$true] %s114_s12 }
  0x29   :  { %141 = vrcp.f32 %v79_v1  ;;  %s191_s13 = scalar_lea.vmem %s105_s10, 128  ;;  %p196_p3 = scmp.lt.s32.totalorder %s105_s10, %s105_s10 }
  0x2a   :  { %p192_p2 = scmp.ne.s32.totalorder %s105_s10, %s191_s13  ;;  %p197_p4 = scmp.lt.s32.totalorder %s191_s13, %s191_s13 }
  0x2c   :  { %p198_p5 = por %p197_p4, %p196_p3 }
  0x2e   :  { %p199_p6 = pnand %p198_p5, %p192_p2 }
  0x32   :  { %v140_v4 = vpop.eup %139 }
  0x33   :  { %v142_v5 = vpop.eup %141  ;;  %v81_v6 = vmul.f32 %v140_v4, %v76_v2 }
  0x34   :  { %v83_v7 = vmul.f32 %v142_v5, %v77_v3 }
  0x35   :  { %143 = vlog2.f32 %v81_v6 }
  0x36   :  { %145 = vlog2.f32 %v83_v7 }
  0x3f   :  { %v144_v8 = vpop.eup %143 }
  0x40   :  { %v146_v9 = vpop.eup %145  ;;  %v85_v10 = vmul.f32 0.6931472, %v144_v8 }
  0x41   :  { %v87_v11 = vmul.f32 0.6931472, %v146_v9 }
  0x42   :  { %v93_v12 = vmul.f32 %v85_v10, %v85_v10 }
  0x43   :  { %v89_v13 = vadd.f32 %v87_v11, %v85_v10  ;;  %v94_v14 = vmul.f32 %v87_v11, %v87_v11 }
  0x45   :  { %v95_v15 = vadd.f32 %v94_v14, %v93_v12  ;;  %91 = vst [vmem:[#allocation7] sm:$0xff] %v89_v13 }
  0x46   :  { %202 = shalt.err (!%p199_p6)
}
  0x47   :  { %s203_s16 = scalar_lea.hbm %s319_s2, 128 }
  0x48   :  { %p204_p7 = scmp.ne.s32.totalorder %s319_s2, %s203_s16  ;;  %p207_p8 = scmp.lt.u32.totalorder %s203_s16, %s319_s2 }
  0x4a   :  { %p209_p9 = pnand %p207_p8, %p204_p7 }
  0x4c   :  { %212 = shalt.err (!%p209_p9)
}
  0x4d   :  { %107 = dma.vmem_to_hbm [thread:$0]  %s105_s10, 128, %s319_s2, [#allocation4]   ;;  %97 = vst [vmem:[#allocation8] sm:$0xff] %v95_v15 }
  0x4e   :  { %s213_s23 = scalar_lea.vmem %s115_s12, 128  ;;  %p218_p11 = scmp.lt.s32.totalorder %s115_s12, %s115_s12 }
  0x4f   :  { %p214_p10 = scmp.ne.s32.totalorder %s115_s12, %s213_s23  ;;  %p219_p12 = scmp.lt.s32.totalorder %s213_s23, %s213_s23 }
  0x51   :  { %p220_p13 = por %p219_p12, %p218_p11 }
  0x53   :  { %p221_p0 = pnand %p220_p13, %p214_p10 }
  0x55   :  { %224 = shalt.err (!%p221_p0)
}
  0x56   :  { %s225_s26 = scalar_lea.hbm %s320_s3, 128 }
  0x57   :  { %p226_p1 = scmp.ne.s32.totalorder %s320_s3, %s225_s26  ;;  %p229_p2 = scmp.lt.u32.totalorder %s225_s26, %s320_s3 }
  0x59   :  { %p231_p3 = pnand %p229_p2, %p226_p1 }
  0x5b   :  { %234 = shalt.err (!%p231_p3)
}
  0x5c   :  { %117 = dma.vmem_to_hbm [thread:$0]  %s115_s12, 128, %s320_s3, [#allocation9]  }
  0x5d   :  { %239 = dma.done.wait [#allocation4], 128  }
  0x5e   :  { %240 = vsyncadd [#allocation4], 4294967168 }
  0x5f   :  { %241 = dma.done.wait [#allocation9], 128  }
  0x60   :  { %242 = vsyncadd [#allocation9], 4294967168 }
  0x61   :  { %124 = vsyncpa [#allocation3], 1 }
  0x62   :  { %125 = vsyncpa [#allocation6], 1 }
  0x63   :  { %126 = vsyncpa [#allocation4], 1 }
  0x64   :  { %127 = vsyncpa [#allocation9], 1 }

</bundles_post_ra>
